<compile_context>
chip_gen: v6e
topology: v6e:2x2x1
jax: 0.10.0
libtpu: 0.0.40
codegen_flags: <defaults>
</compile_context>

<pallas_src>
import functools

import jax
import jax.numpy as jnp
import numpy as np
from jax.experimental import pallas as pl
from jax.experimental.pallas import tpu as pltpu


def _ctg_kernel(x_ref, w_ref, a_ref, b_ref, o_ref, *,
                kernel_size, lane_groups, group, a_first):
    # x_ref: (1, C_in, TVt)     current (n, lane-block) slab (compute dtype)
    # w_ref: (K, C_out, C_in)   1x1 conv weight (resident, compute dtype)
    # a_ref: (K, G, G)          lane-periodic adjacency I (x) A (resident)
    # b_ref: (C_out, G)         folded effective bias, f32 (resident)
    # o_ref: (1, C_out, TVt)    f32 output slab
    x = x_ref[0]                                               # (C_in, TVt)
    for gi in range(lane_groups):                              # static unroll
        lo, hi = gi * group, (gi + 1) * group                  # 128-aligned
        xg = x[:, lo:hi]                                       # (C_in, G)
        acc = b_ref[...]                                       # (C_out, G) f32
        for k in range(kernel_size):                           # static unroll
            if a_first:
                # Graph contraction first: fewer MXU rows when C_in <= C_out.
                zk = jnp.dot(xg, a_ref[k],
                             preferred_element_type=jnp.float32)    # (C_in, G)
                acc = acc + jnp.dot(w_ref[k], zk.astype(w_ref.dtype),
                                    preferred_element_type=jnp.float32)
            else:
                yk = jnp.dot(w_ref[k], xg,
                             preferred_element_type=jnp.float32)    # (C_out, G)
                acc = acc + jnp.dot(yk.astype(a_ref.dtype), a_ref[k],
                                    preferred_element_type=jnp.float32)
        o_ref[0, :, lo:hi] = acc.astype(o_ref.dtype)


def _pad_to_lane_divisor(v):
    """Smallest V_pad >= v such that V_pad | 128 (v <= 128) or 128 | V_pad."""
    if v <= 128:
        for d in (1, 2, 4, 8, 16, 32, 64, 128):
            if d >= v:
                return d
    return ((v + 127) // 128) * 128


def _pick_lane_tile(tv, group, max_tile):
    """Largest multiple of `group` that divides tv and is <= max_tile."""
    best = group
    t = group
    cap = max(max_tile, group)
    while t <= min(tv, cap):
        if tv % t == 0:
            best = t
        t += group
    return best


def conv_temporal_graphical(x, A, weight, bias, *, kernel_size, out_channels,
                            compute_dtype=jnp.bfloat16, max_lane_tile=1024,
                            a_first=None):
    """x:(N,C_in,T,V); A:(K,V,V); weight:(K*C_out,C_in); bias:(K*C_out,).

    compute_dtype: MXU input dtype (bf16 default; f32 for exact numerics).
    Accumulation and output are always float32.  Returns (out, A).
    """
    # TODO(synk): only the default temporal conv (t_kernel_size=1, t_stride=1,
    # t_padding=0, t_dilation=1) is implemented, matching the module defaults.
    N, C_in, T, V = x.shape
    K = kernel_size
    assert A.shape == (K, V, V)
    assert weight.shape == (K * out_channels, C_in)
    assert bias.shape == (K * out_channels,)

    # --- pad V to a divisor of 128 (and T so T*V_pad is a multiple of G) ----
    V_pad = _pad_to_lane_divisor(V)
    G = max(V_pad, 128)                    # lane-group width (multiple of 128)
    t_per_group = G // V_pad
    T_pad = ((T + t_per_group - 1) // t_per_group) * t_per_group
    TV = T_pad * V_pad

    tv_tile = _pick_lane_tile(TV, G, max_lane_tile)
    lane_groups = tv_tile // G
    n_blocks = TV // tv_tile

    # --- prepare operands (one-time; all tiny except the x pad/cast) --------
    if (T_pad, V_pad) != (T, V):
        x = jnp.pad(x, ((0, 0), (0, 0), (0, T_pad - T), (0, V_pad - V)))
    x_flat = x.reshape(N, C_in, TV).astype(compute_dtype)     # free reshape

    w = weight.reshape(K, out_channels, C_in).astype(compute_dtype)

    A_pad = A
    if V_pad != V:
        A_pad = jnp.pad(A, ((0, 0), (0, V_pad - V), (0, V_pad - V)))
    if t_per_group > 1:
        eye = jnp.eye(t_per_group, dtype=A_pad.dtype)
        a_lane = jnp.einsum("ts,kvw->ktvsw", eye, A_pad).reshape(K, G, G)
    else:
        a_lane = A_pad
    a_lane = a_lane.astype(compute_dtype)

    # Effective bias: bias_eff[c,w] = sum_k b[k,c] * sum_v A[k,v,w]; periodic
    # over the G-lane group (padded w-columns get zero, harmless: sliced off).
    colsum = A_pad.sum(axis=1)                                     # (K, V_pad)
    bias_eff = jnp.einsum("kc,kw->cw",
                          bias.reshape(K, out_channels), colsum)   # (C_out,V_pad)
    bias_lane = jnp.tile(bias_eff, (1, t_per_group)).astype(jnp.float32)

    if a_first is None:
        a_first = C_in <= out_channels

    kernel = functools.partial(
        _ctg_kernel, kernel_size=K, lane_groups=lane_groups, group=G,
        a_first=a_first)

    out_flat = pl.pallas_call(
        kernel,
        out_shape=jax.ShapeDtypeStruct((N, out_channels, TV), jnp.float32),
        grid_spec=pltpu.PrefetchScalarGridSpec(
            num_scalar_prefetch=0,
            grid=(N, n_blocks),
            in_specs=[
                pl.BlockSpec((1, C_in, tv_tile), lambda n, j: (n, 0, j)),
                pl.BlockSpec((K, out_channels, C_in), lambda n, j: (0, 0, 0)),
                pl.BlockSpec((K, G, G), lambda n, j: (0, 0, 0)),
                pl.BlockSpec((out_channels, G), lambda n, j: (0, 0)),
            ],
            out_specs=pl.BlockSpec(
                (1, out_channels, tv_tile), lambda n, j: (n, 0, j)),
        ),
        compiler_params=pltpu.CompilerParams(
            dimension_semantics=("parallel", "parallel")),
    )(x_flat, w, a_lane, bias_lane)

    # Free reshape back to the PyTorch layout; slice off any T/V padding.
    out = out_flat.reshape(N, out_channels, T_pad, V_pad)[:, :, :T, :V]
    return out, A


def _reference(x, A, weight, bias, kernel_size, out_channels):
    # Pure-JAX reference mirroring the PyTorch forward (1x1 conv + einsum).
    N, C_in, T, V = x.shape
    y = jnp.einsum("oc,nctv->notv", weight, x) + bias[None, :, None, None]
    y = y.reshape(N, kernel_size, out_channels, T, V)
    return jnp.einsum("nkctv,kvw->nctw", y, A)


if __name__ == "__main__":
    # --- main config: N=2, C_in=4, C_out=8, K=3, T=8, V=16 (T*V = 128) ------
    N, C_in, C_out, K, T, V = 2, 4, 8, 3, 8, 16
    kx, ka, kw, kb = jax.random.split(jax.random.PRNGKey(0), 4)
    x = jax.random.normal(kx, (N, C_in, T, V), dtype=jnp.float32)
    A = jax.random.normal(ka, (K, V, V), dtype=jnp.float32)
    # PyTorch Conv2d(in, K*C_out, (1,1)) weight (K*C_out, C_in, 1, 1) collapsed.
    weight = 0.1 * jax.random.normal(kw, (K * C_out, C_in), dtype=jnp.float32)
    bias = 0.1 * jax.random.normal(kb, (K * C_out,), dtype=jnp.float32)
    ref = _reference(x, A, weight, bias, K, C_out)

    # f32 MXU path: exact to tight tolerance on all generations.
    out_f32, A_out = conv_temporal_graphical(
        x, A, weight, bias, kernel_size=K, out_channels=C_out,
        compute_dtype=jnp.float32)
    out_f32 = jax.block_until_ready(out_f32)
    np.testing.assert_allclose(np.asarray(out_f32), np.asarray(ref),
                               rtol=1e-4, atol=1e-4)
    assert out_f32.shape == (N, C_out, T, V)
    assert A_out.shape == (K, V, V)

    # Default bf16-MXU path (f32 accumulation): looser tolerance.
    out_bf16, _ = conv_temporal_graphical(
        x, A, weight, bias, kernel_size=K, out_channels=C_out)
    out_bf16 = jax.block_until_ready(out_bf16)
    np.testing.assert_allclose(np.asarray(out_bf16), np.asarray(ref),
                               rtol=5e-2, atol=5e-2)

    # --- padded config: real ST-GCN graph size V=18, odd T, C_in > C_out ----
    # Exercises V->32 / T->8 zero padding, multiple 128-lane groups per tile,
    # and the conv-first ordering branch.
    N2, C_in2, C_out2, K2, T2, V2 = 1, 6, 4, 2, 7, 18
    kx2, ka2, kw2, kb2 = jax.random.split(jax.random.PRNGKey(1), 4)
    x2 = jax.random.normal(kx2, (N2, C_in2, T2, V2), dtype=jnp.float32)
    A2 = jax.random.normal(ka2, (K2, V2, V2), dtype=jnp.float32)
    w2 = 0.1 * jax.random.normal(kw2, (K2 * C_out2, C_in2), dtype=jnp.float32)
    b2 = 0.1 * jax.random.normal(kb2, (K2 * C_out2,), dtype=jnp.float32)
    ref2 = _reference(x2, A2, w2, b2, K2, C_out2)
    out2, _ = conv_temporal_graphical(
        x2, A2, w2, b2, kernel_size=K2, out_channels=C_out2,
        compute_dtype=jnp.float32)
    out2 = jax.block_until_ready(out2)
    np.testing.assert_allclose(np.asarray(out2), np.asarray(ref2),
                               rtol=1e-4, atol=1e-4)
    assert out2.shape == (N2, C_out2, T2, V2)

    print("KERNEL_OK")
</pallas_src>

<mosaic_0001>
module attributes {stable_mosaic.version = 11 : i64} {
  func.func @_ctg_kernel(%arg0: i32, %arg1: i32, %arg2: memref<1x4x128xf32, #tpu.memory_space<vmem>>, %arg3: memref<3x8x4xf32, #tpu.memory_space<vmem>>, %arg4: memref<3x128x128xf32, #tpu.memory_space<vmem>>, %arg5: memref<8x128xf32, #tpu.memory_space<vmem>>, %arg6: memref<1x8x128xf32, #tpu.memory_space<vmem>>) attributes {dimension_semantics = [#tpu.dimension_semantics<parallel>, #tpu.dimension_semantics<parallel>], iteration_bounds = array<i64: 2, 1>, scalar_prefetch = 0 : i64, scratch_operands = 0 : i64, tpu.core_type = #tpu.core_type<tc>, window_params = [{transform_indices = @transform_0, window_bounds = array<i64: 1, 4, 128>}, {pipeline_mode = #tpu.pipeline_mode<synchronous>, transform_indices = @transform_1, window_bounds = array<i64: 3, 8, 4>}, {pipeline_mode = #tpu.pipeline_mode<synchronous>, transform_indices = @transform_2, window_bounds = array<i64: 3, 128, 128>}, {pipeline_mode = #tpu.pipeline_mode<synchronous>, transform_indices = @transform_3, window_bounds = array<i64: 8, 128>}, {transform_indices = @transform_4, window_bounds = array<i64: 1, 8, 128>}]} {
    %c0 = arith.constant 0 : index
    %c0_0 = arith.constant 0 : index
    %c0_1 = arith.constant 0 : index
    %0 = vector.load %arg2[%c0, %c0_0, %c0_1] : memref<1x4x128xf32, #tpu.memory_space<vmem>>, vector<1x4x128xf32>
    %1 = vector.shape_cast %0 : vector<1x4x128xf32> to vector<4x128xf32>
    %c0_2 = arith.constant 0 : index
    %c0_3 = arith.constant 0 : index
    %2 = vector.load %arg5[%c0_2, %c0_3] : memref<8x128xf32, #tpu.memory_space<vmem>>, vector<8x128xf32>
    %c0_4 = arith.constant 0 : index
    %c0_5 = arith.constant 0 : index
    %c0_6 = arith.constant 0 : index
    %3 = vector.load %arg4[%c0_4, %c0_5, %c0_6] : memref<3x128x128xf32, #tpu.memory_space<vmem>>, vector<1x128x128xf32>
    %4 = vector.shape_cast %3 : vector<1x128x128xf32> to vector<128x128xf32>
    %cst = arith.constant dense<0.000000e+00> : vector<4x128xf32>
    %5 = tpu.matmul %1, %4, %cst {dimension_numbers = #tpu.dot_dimension_numbers<[1], [0], [0], [1], [0, 0, 1, 1], [], []>} : vector<4x128xf32>, vector<128x128xf32>, vector<4x128xf32> -> vector<4x128xf32>
    %c0_7 = arith.constant 0 : index
    %c0_8 = arith.constant 0 : index
    %c0_9 = arith.constant 0 : index
    %6 = vector.load %arg3[%c0_7, %c0_8, %c0_9] : memref<3x8x4xf32, #tpu.memory_space<vmem>>, vector<1x8x4xf32>
    %7 = vector.shape_cast %6 : vector<1x8x4xf32> to vector<8x4xf32>
    %cst_10 = arith.constant dense<0.000000e+00> : vector<8x128xf32>
    %8 = tpu.matmul %7, %5, %cst_10 {dimension_numbers = #tpu.dot_dimension_numbers<[1], [0], [0], [1], [0, 0, 1, 1], [], []>} : vector<8x4xf32>, vector<4x128xf32>, vector<8x128xf32> -> vector<8x128xf32>
    %9 = arith.addf %2, %8 : vector<8x128xf32>
    %c1 = arith.constant 1 : index
    %c0_11 = arith.constant 0 : index
    %c0_12 = arith.constant 0 : index
    %10 = vector.load %arg4[%c1, %c0_11, %c0_12] : memref<3x128x128xf32, #tpu.memory_space<vmem>>, vector<1x128x128xf32>
    %11 = vector.shape_cast %10 : vector<1x128x128xf32> to vector<128x128xf32>
    %cst_13 = arith.constant dense<0.000000e+00> : vector<4x128xf32>
    %12 = tpu.matmul %1, %11, %cst_13 {dimension_numbers = #tpu.dot_dimension_numbers<[1], [0], [0], [1], [0, 0, 1, 1], [], []>} : vector<4x128xf32>, vector<128x128xf32>, vector<4x128xf32> -> vector<4x128xf32>
    %c1_14 = arith.constant 1 : index
    %c0_15 = arith.constant 0 : index
    %c0_16 = arith.constant 0 : index
    %13 = vector.load %arg3[%c1_14, %c0_15, %c0_16] : memref<3x8x4xf32, #tpu.memory_space<vmem>>, vector<1x8x4xf32>
    %14 = vector.shape_cast %13 : vector<1x8x4xf32> to vector<8x4xf32>
    %cst_17 = arith.constant dense<0.000000e+00> : vector<8x128xf32>
    %15 = tpu.matmul %14, %12, %cst_17 {dimension_numbers = #tpu.dot_dimension_numbers<[1], [0], [0], [1], [0, 0, 1, 1], [], []>} : vector<8x4xf32>, vector<4x128xf32>, vector<8x128xf32> -> vector<8x128xf32>
    %16 = arith.addf %9, %15 : vector<8x128xf32>
    %c2 = arith.constant 2 : index
    %c0_18 = arith.constant 0 : index
    %c0_19 = arith.constant 0 : index
    %17 = vector.load %arg4[%c2, %c0_18, %c0_19] : memref<3x128x128xf32, #tpu.memory_space<vmem>>, vector<1x128x128xf32>
    %18 = vector.shape_cast %17 : vector<1x128x128xf32> to vector<128x128xf32>
    %cst_20 = arith.constant dense<0.000000e+00> : vector<4x128xf32>
    %19 = tpu.matmul %1, %18, %cst_20 {dimension_numbers = #tpu.dot_dimension_numbers<[1], [0], [0], [1], [0, 0, 1, 1], [], []>} : vector<4x128xf32>, vector<128x128xf32>, vector<4x128xf32> -> vector<4x128xf32>
    %c2_21 = arith.constant 2 : index
    %c0_22 = arith.constant 0 : index
    %c0_23 = arith.constant 0 : index
    %20 = vector.load %arg3[%c2_21, %c0_22, %c0_23] : memref<3x8x4xf32, #tpu.memory_space<vmem>>, vector<1x8x4xf32>
    %21 = vector.shape_cast %20 : vector<1x8x4xf32> to vector<8x4xf32>
    %cst_24 = arith.constant dense<0.000000e+00> : vector<8x128xf32>
    %22 = tpu.matmul %21, %19, %cst_24 {dimension_numbers = #tpu.dot_dimension_numbers<[1], [0], [0], [1], [0, 0, 1, 1], [], []>} : vector<8x4xf32>, vector<4x128xf32>, vector<8x128xf32> -> vector<8x128xf32>
    %23 = arith.addf %16, %22 : vector<8x128xf32>
    %c0_25 = arith.constant 0 : index
    %c0_26 = arith.constant 0 : index
    %c0_27 = arith.constant 0 : index
    %24 = vector.load %arg6[%c0_25, %c0_26, %c0_27] : memref<1x8x128xf32, #tpu.memory_space<vmem>>, vector<1x8x128xf32>
    %25 = vector.shape_cast %24 : vector<1x8x128xf32> to vector<8x128xf32>
    %26 = vector.shape_cast %23 : vector<8x128xf32> to vector<1x8x128xf32>
    tpu.vector_store %arg6[%c0_25, %c0_26, %c0_27], %26 {strides = array<i32>} : memref<1x8x128xf32, #tpu.memory_space<vmem>>, vector<1x8x128xf32>,
    return
  }
  func.func @transform_0(%arg0: i32, %arg1: i32) -> (i32, i32, i32) {
    %c0_i32 = arith.constant 0 : i32
    %c0_i32_0 = arith.constant 0 : i32
    return %arg0, %c0_i32, %arg1 : i32, i32, i32
  }
  func.func @transform_1(%arg0: i32, %arg1: i32) -> (i32, i32, i32) {
    %c0_i32 = arith.constant 0 : i32
    %c0_i32_0 = arith.constant 0 : i32
    %c0_i32_1 = arith.constant 0 : i32
    %c0_i32_2 = arith.constant 0 : i32
    return %c0_i32, %c0_i32_0, %c0_i32_1 : i32, i32, i32
  }
  func.func @transform_2(%arg0: i32, %arg1: i32) -> (i32, i32, i32) {
    %c0_i32 = arith.constant 0 : i32
    %c0_i32_0 = arith.constant 0 : i32
    %c0_i32_1 = arith.constant 0 : i32
    %c0_i32_2 = arith.constant 0 : i32
    return %c0_i32, %c0_i32_0, %c0_i32_1 : i32, i32, i32
  }
  func.func @transform_3(%arg0: i32, %arg1: i32) -> (i32, i32) {
    %c0_i32 = arith.constant 0 : i32
    %c0_i32_0 = arith.constant 0 : i32
    %c0_i32_1 = arith.constant 0 : i32
    return %c0_i32, %c0_i32_0 : i32, i32
  }
  func.func @transform_4(%arg0: i32, %arg1: i32) -> (i32, i32, i32) {
    %c0_i32 = arith.constant 0 : i32
    %c0_i32_0 = arith.constant 0 : i32
    return %arg0, %c0_i32, %arg1 : i32, i32, i32
  }
}

</mosaic_0001>

<bundles_post_ra>
// kernel: tpu_custom_call.1
= control target key start
LH: loop header
LB: loop body
LE: loop exit
PB: predicated region body
PF: predicated region fallthrough
CT: control target
= control target key end

     0   :  { %9 = vsyncpa [#allocation3], 0  ;;  %s1446_s0 = inlined_call_operand.vmem [shape: f32[2,4,128], index: 0, kind: input, shape index: {}]   ;;  %s1447_s1 = inlined_call_operand.vmem [shape: f32[3,8,4], index: 1, kind: input, shape index: {}]   ;;  %s1448_s2 = inlined_call_operand.hbm [shape: f32[3,128,128], index: 2, kind: input, shape index: {}]   ;;  %s1449_s3 = inlined_call_operand.vmem [shape: f32[8,128], index: 3, kind: input, shape index: {}]   ;;  %s1450_s4 = inlined_call_operand.hbm [shape: f32[2,8,128], index: 4, kind: output, shape index: {}]  }
   0x1   :  { %10 = vsyncpa [#allocation4], 0 }
   0x2   :  { %12 = vsyncpa [#allocation4 + $0x1], 0  ;;  %s1239_s15 = smov 0   ;;  %s1241_s16 = smov 0  }
   0x3   :  { %s1243_s17 = smov 0   ;;  %s1245_s18 = smov 0  }
   0x4   :  { %s1247_s19 = smov 0   ;;  %s1249_s20 = smov 0  }
   0x5 LB: > { %s832_s21 = sadd.s32 4294967295, %s1206_s20   ;;  %s833_s22 = sadd.s32 4294967294, %s1206_s20   ;;  %s1206_s20 = sphi %s1249_s20, %s18_s20   ;;  %s1202_s19 = sphi %s1247_s19, %s1459_s19   ;;  %s1198_s18 = sphi %s1245_s18, %s1458_s18   ;;  %s1194_s17 = sphi %s1243_s17, %s1457_s17   ;;  %s1190_s16 = sphi %s1241_s16, %s1456_s16   ;;  %s1186_s15 = sphi %s1239_s15, %s1455_s15  }
   0x6   : > { %s30_s23 = sadd.s32 1, %s1202_s19  ;;  %s130_s24 = sadd.s32 1, %s1194_s17 }
   0x7   : > { %p32_p0 = scmp.ge.s32.totalorder %s30_s23, 2  ;;  %p140_p1 = scmp.ne.s32.totalorder %s1194_s17, %s1190_s16 }
   0x8   : > { %p141_p2 = scmp.eq.s32.totalorder %s832_s21, 1  ;;  %p146_p3 = scmp.ne.s32.totalorder %s1190_s16, %s1186_s15 }
   0x9   : > { %s1461_s23 = smov (%p32_p0, %s30_s23), 0  ;;  %p147_p5 = scmp.eq.s32.totalorder %s833_s22, 1 }
   0xa   : > { %p1279_p4 = por %p141_p2, %p140_p1  ;;  %s125_s26 = ssub.s32 %s1202_s19, %s1461_s23 }
   0xb   : > { %p834_p6 = scmp.ge.s32.totalorder %s1206_s20, 1  ;;  %p128_p7 = scmp.eq.s32.totalorder %s125_s26, 0 }
   0xc   : > { %p1286_p8 = por %p147_p5, %p146_p3  ;;  %p154_p9 = scmp.lt.s32.totalorder %s1206_s20, 3 }
   0xd   : > { %s1292_s28 = scalar_select %p128_p7, %s1194_s17, %s130_s24  }
   0xe   : > { %p1294_p10 = pnand %p834_p6, %p154_p9  ;;  %p1298_p11 = scmp.eq.s32.totalorder %s832_s21, 0 }
   0xf   : > { %s1208_s5 = smov [#allocation2]  }
  0x10   : > { %p1036_p12 = pneg %p1294_p10  ;;  %s169_s6 = sshll.u32 %s1208_s5, 4  ;;  %s170_s6 = int_to_ptr.vmem [resolvable:$true] %s169_s6 }
  0x11   : > { %s1111_s7 = scalar_lea.vmem %s170_s6, 6144  ;;  %p1119_p5 = scmp.lt.s32.totalorder %s170_s6, %s170_s6 }
  0x12   : > { %p1037_p13 = pnand %p1298_p11, %p1036_p12  ;;  %p1112_p1 = scmp.ne.s32.totalorder %s170_s6, %s1111_s7 }
  0x13   : > { %p1120_p6 = scmp.lt.s32.totalorder %s1111_s7, %s1111_s7 }
  0x14   : > { %p1102_p0 = pneg %p1037_p13 }
  0x15   : > { %p1121_p7 = por %p1120_p6, %p1119_p5 }
  0x16   : > { %p1114_p2 = pnand %p1112_p1, %p1102_p0 }
  0x18   : > { %p1115_p3 = pneg %p1114_p2 }
  0x1a   : > { %p1122_p9 = pnand %p1121_p7, %p1115_p3 }
  0x1c   : > { %1125 = shalt.err (!%p1122_p9)
}
  0x1d   : > { %s1209_s8 = smov 128   ;;  %s1210_s9 = smov 8  }
  0x1e   : > { %1039 = dma.hbm_to_vmem [thread:$0]  (!%p1037_p13), %s1448_s2, 6144, %s170_s6, [#allocation3], %s1209_s8, %s1209_s8, %s1210_s9  }
  0x1f   : > { %198 = sbr.rel (%p1294_p10) target bundleno = 506 (0x1fa), region = 36 }
  0x24   : > { %1177 = dma.done.wait (%p1298_p11), [#allocation3], 6144  }
  0x25   : > { %1179 = vsyncadd (%p1298_p11), [#allocation3], 4294961152  ;;  %v1211_v0 = vmov 0.0   ;;  %vm1212_vm0 = vmmov 0   ;;  %v250_v1 = vld [vmem:[#allocation2 + $0x78] sm:$0xff]  ;;  %v249_v3 = vld [vmem:[#allocation2 + $0x70] sm:$0xff] }
  0x26   : > { %910 = vmatprep.subr.mxu0 %v1211_v0  ;;  %950 = vmatprep.subr.mxu1 %v1211_v0  ;;  %v417_v2 = vld [vmem:[#allocation2 + $0xf8] sm:$0xff]  ;;  %v416_v4 = vld [vmem:[#allocation2 + $0xf0] sm:$0xff]  ;;  %v248_v5 = vld [vmem:[#allocation2 + $0x68] sm:$0xff]  ;;  %p226_p10 = scmp.lt.s32.totalorder %s1198_s18, 1  ;;  %vm326_vm1 = vcmask 1043456   ;;  %vm322_vm2 = vcmask 31744  }
  0x27   : > { %942 = vmatprep.mubr.msk.f32.mxu0 %vm1212_vm0, %v1211_v0  ;;  %982 = vmatprep.mubr.msk.f32.mxu1 %vm1212_vm0, %v1211_v0  ;;  %v415_v6 = vld [vmem:[#allocation2 + $0xe8] sm:$0xff]  ;;  %v247_v7 = vld [vmem:[#allocation2 + $0x60] sm:$0xff]  ;;  %v246_v9 = vld [vmem:[#allocation2 + $0x58] sm:$0xff]  ;;  %s223_s7 = sand.u32 1, %s1190_s16   ;;  %s850_s11 = sshll.u32 %s1198_s18, 7 }
  0x28   : > { %911 = vmatpush3.msra.mxu0 %v250_v1  ;;  %951 = vmatpush3.msra.mxu1 %v417_v2  ;;  %v414_v8 = vld [vmem:[#allocation2 + $0xe0] sm:$0xff]  ;;  %v413_v10 = vld [vmem:[#allocation2 + $0xd8] sm:$0xff]  ;;  %v245_v11 = vld [vmem:[#allocation2 + $0x50] sm:$0xff]  ;;  %s227_s12 = scalar_select %p226_p10, %s1198_s18, 1 }
  0x29   : > { %912 = vmatprep.subr.mxu0 %v1211_v0  ;;  %952 = vmatprep.subr.mxu1 %v1211_v0  ;;  %v412_v12 = vld [vmem:[#allocation2 + $0xd0] sm:$0xff]  ;;  %v244_v13 = vld [vmem:[#allocation2 + $0x48] sm:$0xff]  ;;  %v243_v15 = vld [vmem:[#allocation2 + $0x40] sm:$0xff]  ;;  %s839_s10 = sshll.u32 %s223_s7, 3  ;;  %s735_s24 = scalar_lea.sflag [#allocation4], %s223_s7 }
  0x2a   : > { %913 = vmatpush3.msra.mxu0 %v249_v3  ;;  %953 = vmatpush3.msra.mxu1 %v416_v4  ;;  %v411_v14 = vld [vmem:[#allocation2 + $0xc8] sm:$0xff]  ;;  %v410_v16 = vld [vmem:[#allocation2 + $0xc0] sm:$0xff]  ;;  %v242_v17 = vld [vmem:[#allocation2 + $0x38] sm:$0xff]  ;;  %s840_s13 = sshll.u32 %s227_s12, 2  ;;  %s225_s12 = scalar_lea.vmem [#allocation5], %s839_s10 }
  0x2b   : > { %914 = vmatprep.subr.mxu0 %v1211_v0  ;;  %954 = vmatprep.subr.mxu1 %v1211_v0  ;;  %v409_v18 = vld [vmem:[#allocation2 + $0xb8] sm:$0xff]  ;;  %v241_v19 = vld [vmem:[#allocation2 + $0x30] sm:$0xff]  ;;  %v240_v21 = vld [vmem:[#allocation2 + $0x28] sm:$0xff]  ;;  %s232_s22 = scalar_lea.vmem %s1446_s0, %s840_s13  ;;  %s749_s13 = sshll.u32 %s225_s12, 4  ;;  %s750_s13 = int_to_ptr.vmem [resolvable:$true] %s749_s13 }
  0x2c   : > { %915 = vmatpush3.msra.mxu0 %v248_v5  ;;  %955 = vmatpush3.msra.mxu1 %v415_v6  ;;  %v408_v20 = vld [vmem:[#allocation2 + $0xb0] sm:$0xff]  ;;  %v407_v22 = vld [vmem:[#allocation2 + $0xa8] sm:$0xff]  ;;  %v239_v23 = vld [vmem:[#allocation2 + $0x20] sm:$0xff]  ;;  %s1126_s26 = scalar_lea.vmem %s750_s13, 128  ;;  %s1213_s18 = smov [#allocation5]  }
  0x2d   : > { %916 = vmatprep.subr.mxu0 %v1211_v0  ;;  %956 = vmatprep.subr.mxu1 %v1211_v0  ;;  %v406_v24 = vld [vmem:[#allocation2 + $0xa0] sm:$0xff]  ;;  %v238_v25 = vld [vmem:[#allocation2 + $0x18] sm:$0xff]  ;;  %v237_v27 = vld [vmem:[#allocation2 + $0x10] sm:$0xff]  ;;  %p1127_p11 = scmp.ne.s32.totalorder %s750_s13, %s1126_s26  ;;  %s1130_s29 = sshll.u32 %s1213_s18, 4  ;;  %s1131_s29 = int_to_ptr.vmem [resolvable:$false] %s1130_s29 }
  0x2e   : > { %917 = vmatpush3.msra.mxu0 %v247_v7  ;;  %957 = vmatpush3.msra.mxu1 %v414_v8  ;;  %v405_v26 = vld [vmem:[#allocation2 + $0x98] sm:$0xff]  ;;  %v404_v28 = vld [vmem:[#allocation2 + $0x90] sm:$0xff]  ;;  %v236_v29 = vld [vmem:[#allocation2 + $0x8] sm:$0xff]  ;;  %s1132_s30 = scalar_lea.vmem %s1131_s29, 256  ;;  %p1133_p0 = scmp.lt.s32.totalorder %s750_s13, %s1131_s29 }
  0x2f   : > { %918 = vmatprep.subr.mxu0 %v1211_v0  ;;  %958 = vmatprep.subr.mxu1 %v1211_v0  ;;  %v403_v30 = vld [vmem:[#allocation2 + $0x88] sm:$0xff]  ;;  %v235_v31 = vld [vmem:[#allocation2] sm:$0xff]  ;;  %v583_v34 = vld [vmem:[#allocation2 + $0x178] sm:$0xff]  ;;  %p1128_p12 = pnand %p1127_p11, %p1279_p4  ;;  %p1134_p1 = scmp.lt.s32.totalorder %s1132_s30, %s1126_s26 }
  0x30   : > { %919 = vmatpush3.msra.mxu0 %v246_v9  ;;  %959 = vmatpush3.msra.mxu1 %v413_v10  ;;  %v402_v32 = vld [vmem:[#allocation2 + $0x80] sm:$0xff]  ;;  %v582_v35 = vld [vmem:[#allocation2 + $0x170] sm:$0xff]  ;;  %v581_v36 = vld [vmem:[#allocation2 + $0x168] sm:$0xff] }
  0x31   : > { %920 = vmatprep.subr.mxu0 %v1211_v0  ;;  %960 = vmatprep.subr.mxu1 %v1211_v0  ;;  %v233_v33 = vld [vmem:[%s232_s22] sm:$0xf]  ;;  %v579_v38 = vld [vmem:[#allocation2 + $0x158] sm:$0xff]  ;;  %v578_v39 = vld [vmem:[#allocation2 + $0x150] sm:$0xff]  ;;  %s1406_s22 = scalar_lea.hbm %s1450_s4, %s850_s11  ;;  %p1129_p13 = pneg %p1128_p12 }
  0x32   : > { %921 = vmatpush3.msra.mxu0 %v245_v11  ;;  %961 = vmatpush3.msra.mxu1 %v412_v12  ;;  %v580_v37 = vld [vmem:[#allocation2 + $0x160] sm:$0xff]  ;;  %v577_v40 = vld [vmem:[#allocation2 + $0x148] sm:$0xff]  ;;  %v575_v42 = vld [vmem:[#allocation2 + $0x138] sm:$0xff]  ;;  %p1135_p2 = por %p1134_p1, %p1133_p0 }
  0x33   : > { %922 = vmatprep.subr.mxu0 %v1211_v0  ;;  %962 = vmatprep.subr.mxu1 %v1211_v0  ;;  %v576_v41 = vld [vmem:[#allocation2 + $0x140] sm:$0xff]  ;;  %v574_v43 = vld [vmem:[#allocation2 + $0x130] sm:$0xff]  ;;  %v573_v44 = vld [vmem:[#allocation2 + $0x128] sm:$0xff] }
  0x34   : > { %923 = vmatpush3.msra.mxu0 %v244_v13  ;;  %963 = vmatpush3.msra.mxu1 %v411_v14  ;;  %v572_v45 = vld [vmem:[#allocation2 + $0x120] sm:$0xff]  ;;  %v571_v46 = vld [vmem:[#allocation2 + $0x118] sm:$0xff]  ;;  %v570_v47 = vld [vmem:[#allocation2 + $0x110] sm:$0xff]  ;;  %p1136_p3 = pnand %p1135_p2, %p1129_p13 }
  0x35   : > { %924 = vmatprep.subr.mxu0 %v1211_v0  ;;  %964 = vmatprep.subr.mxu1 %v1211_v0  ;;  %v569_v48 = vld [vmem:[#allocation2 + $0x108] sm:$0xff]  ;;  %v568_v49 = vld [vmem:[#allocation2 + $0x100] sm:$0xff]  ;;  %v846_v56 = vld [vmem:[%s1447_s1 + $0x10] sm:$0xff] }
  0x36   : > { %925 = vmatpush3.msra.mxu0 %v243_v15  ;;  %965 = vmatpush3.msra.mxu1 %v410_v16  ;;  %v321_v50 = vld [vmem:[%s1447_s1] sm:$0xff]  ;;  %v843_v55 = vld [vmem:[%s1447_s1 + $0x8] sm:$0xff] }
  0x37   : > { %926 = vmatprep.subr.mxu0 %v1211_v0  ;;  %966 = vmatprep.subr.mxu1 %v1211_v0  ;;  %v234_v63 = vld [vmem:[%s1449_s3] sm:$0xff] }
  0x38   : > { %927 = vmatpush3.msra.mxu0 %v242_v17  ;;  %967 = vmatpush3.msra.mxu1 %v409_v18 }
  0x39   : > { %928 = vmatprep.subr.mxu0 %v1211_v0  ;;  %968 = vmatprep.subr.mxu1 %v1211_v0 }
  0x3a   : > { %929 = vmatpush3.msra.mxu0 %v241_v19  ;;  %969 = vmatpush3.msra.mxu1 %v408_v20 }
  0x3b   : > { %930 = vmatprep.subr.mxu0 %v1211_v0  ;;  %970 = vmatprep.subr.mxu1 %v1211_v0 }
  0x3c   : > { %931 = vmatpush3.msra.mxu0 %v240_v21  ;;  %971 = vmatpush3.msra.mxu1 %v407_v22 }
  0x3d   : > { %932 = vmatprep.subr.mxu0 %v1211_v0  ;;  %972 = vmatprep.subr.mxu1 %v1211_v0 }
  0x3e   : > { %933 = vmatpush3.msra.mxu0 %v239_v23  ;;  %973 = vmatpush3.msra.mxu1 %v406_v24 }
  0x3f   : > { %934 = vmatprep.subr.mxu0 %v1211_v0  ;;  %974 = vmatprep.subr.mxu1 %v1211_v0 }
  0x40   : > { %935 = vmatpush3.msra.mxu0 %v238_v25  ;;  %975 = vmatpush3.msra.mxu1 %v405_v26 }
  0x41   : > { %936 = vmatprep.subr.mxu0 %v1211_v0  ;;  %976 = vmatprep.subr.mxu1 %v1211_v0 }
  0x42   : > { %937 = vmatpush3.msra.mxu0 %v237_v27  ;;  %977 = vmatpush3.msra.mxu1 %v404_v28 }
  0x43   : > { %938 = vmatprep.subr.mxu0 %v1211_v0  ;;  %978 = vmatprep.subr.mxu1 %v1211_v0 }
  0x44   : > { %939 = vmatpush3.msra.mxu0 %v236_v29  ;;  %979 = vmatpush3.msra.mxu1 %v403_v30 }
  0x45   : > { %940 = vmatprep.subr.mxu0 %v1211_v0  ;;  %980 = vmatprep.subr.mxu1 %v1211_v0 }
  0x46   : > { %941 = vmatpush3.msra.mxu0 %v235_v31  ;;  %981 = vmatpush3.msra.mxu1 %v402_v32 }
  0x47   : > { %943 = vmatmul.mubr.f32.vlgmr.msra.gmra.mxu0 %v233_v33  ;;  %983 = vmatmul.mubr.f32.vlgmr.msra.gmra.mxu1 %v233_v33 }
  0x48   : > { %990 = vmatprep.subr.mxu1 %v1211_v0  ;;  %1022 = vmatprep.mubr.msk.f32.mxu1 %vm1212_vm0, %v1211_v0 }
  0x49   : > { %991 = vmatpush3.msra.mxu1 %v583_v34  ;;  %945 = vmatprep.subr.mxu0 %v1211_v0 }
  0x4a   : > { %992 = vmatprep.subr.mxu1 %v1211_v0  ;;  %947 = vmatprep.mubr.msk.f32.mxu0 %vm1212_vm0, %v1211_v0 }
  0x4b   : > { %993 = vmatpush3.msra.mxu1 %v582_v35 }
  0x4c   : > { %994 = vmatprep.subr.mxu1 %v1211_v0 }
  0x4d   : > { %995 = vmatpush3.msra.mxu1 %v581_v36 }
  0x4e   : > { %996 = vmatprep.subr.mxu1 %v1211_v0 }
  0x4f   : > { %997 = vmatpush3.msra.mxu1 %v580_v37 }
  0x50   : > { %998 = vmatprep.subr.mxu1 %v1211_v0 }
  0x51   : > { %999 = vmatpush3.msra.mxu1 %v579_v38 }
  0x52   : > { %1000 = vmatprep.subr.mxu1 %v1211_v0 }
  0x53   : > { %1001 = vmatpush3.msra.mxu1 %v578_v39 }
  0x54   : > { %1002 = vmatprep.subr.mxu1 %v1211_v0 }
  0x55   : > { %1003 = vmatpush3.msra.mxu1 %v577_v40 }
  0x56   : > { %1004 = vmatprep.subr.mxu1 %v1211_v0 }
  0x57   : > { %1005 = vmatpush3.msra.mxu1 %v576_v41 }
  0x58   : > { %1006 = vmatprep.subr.mxu1 %v1211_v0 }
  0x59   : > { %1007 = vmatpush3.msra.mxu1 %v575_v42 }
  0x5a   : > { %1008 = vmatprep.subr.mxu1 %v1211_v0 }
  0x5b   : > { %1009 = vmatpush3.msra.mxu1 %v574_v43 }
  0x5c   : > { %1010 = vmatprep.subr.mxu1 %v1211_v0 }
  0x5d   : > { %1011 = vmatpush3.msra.mxu1 %v573_v44 }
  0x5e   : > { %1012 = vmatprep.subr.mxu1 %v1211_v0 }
  0x5f   : > { %1013 = vmatpush3.msra.mxu1 %v572_v45 }
  0x60   : > { %1014 = vmatprep.subr.mxu1 %v1211_v0 }
  0x61   : > { %1015 = vmatpush3.msra.mxu1 %v571_v46 }
  0x62   : > { %1016 = vmatprep.subr.mxu1 %v1211_v0 }
  0x63   : > { %1017 = vmatpush3.msra.mxu1 %v570_v47 }
  0x64   : > { %1018 = vmatprep.subr.mxu1 %v1211_v0 }
  0x65   : > { %1019 = vmatpush3.msra.mxu1 %v569_v48 }
  0x66   : > { %1020 = vmatprep.subr.mxu1 %v1211_v0 }
  0x67   : > { %1021 = vmatpush3.msra.mxu1 %v568_v49 }
  0x68   : > { %1023 = vmatmul.mubr.f32.vlgmr.msra.gmra.mxu1 %v233_v33 }
 0x107   : > { %v317_v51 = vpop.f32.mrf.mxu0  ;;  %v484_v52 = vpop.f32.mrf.mxu1 }
 0x108   : > { %946 = vmatpush3.msk.msra.mxu0 %vm326_vm1, %v317_v51 }
 0x109   : > { %v984_v53 = vpop.f32.mrf.mxu1  ;;  %985 = vmatprep.subr.mxu0 %v1211_v0  ;;  %948 = vmatmul.mubr.msk.f32.vlgmr.msra.gmra.mxu0 %vm322_vm2, %v321_v50  ;;  %v944_v54 = vpop.f32.mrf.mxu0 }
 0x10a   : > { %986 = vmatpush3.msk.msra.mxu0 %vm326_vm1, %v484_v52  ;;  %987 = vmatprep.mubr.msk.f32.mxu0 %vm1212_vm0, %v1211_v0 }
 0x10b   : > { %1025 = vmatprep.subr.mxu0 %v1211_v0 }
 0x10d   : > { %988 = vmatmul.mubr.msk.f32.vlgmr.msra.gmra.mxu0 %vm322_vm2, %v843_v55 }
 0x10e   : > { %1027 = vmatprep.mubr.msk.f32.mxu0 %vm1212_vm0, %v1211_v0 }
 0x128   : > { %v650_v57 = vpop.f32.mrf.mxu1 }
 0x129   : > { %1026 = vmatpush3.msk.msra.mxu0 %vm326_vm1, %v650_v57 }
 0x12a   : > { %v1024_v58 = vpop.f32.mrf.mxu1  ;;  %1028 = vmatmul.mubr.msk.f32.vlgmr.msra.gmra.mxu0 %vm322_vm2, %v846_v56 }
 0x1c9   : > { %v396_v59 = vpop.f32.mrf.mxu0 }
 0x1ca   : > { %v400_v0 = vadd.f32 %v396_v59, %v234_v63 }
 0x1cb   : > { %v949_v60 = vpop.f32.mrf.mxu0 }
 0x1cd   : > { %v562_v61 = vpop.f32.mrf.mxu0 }
 0x1ce   : > { %v566_v1 = vadd.f32 %v562_v61, %v400_v0 }
 0x1cf   : > { %v989_v62 = vpop.f32.mrf.mxu0 }
 0x1ea   : > { %v728_v2 = vpop.f32.mrf.mxu0 }
 0x1eb   : > { %v732_v3 = vadd.f32 %v728_v2, %v566_v1 }
 0x1ec   : > { %v1029_v4 = vpop.f32.mrf.mxu0 }
 0x1ed   : > { %733 = vst [vmem:[%s225_s12] sm:$0xff] %v732_v3 }
 0x1ee   : > { %1139 = shalt.err (!%p1136_p3)
}
 0x1ef   : > { %s1140_s5 = scalar_lea.hbm %s1406_s22, 128  ;;  %s1144_s8 = scalar_lea.hbm %s1450_s4, 256 }
 0x1f0   : > { %p1141_p5 = scmp.ne.s32.totalorder %s1406_s22, %s1140_s5  ;;  %p1145_p9 = scmp.lt.s32.totalorder %s1406_s22, %s1450_s4 }
 0x1f1   : > { %p1146_p10 = scmp.lt.s32.totalorder %s1144_s8, %s1140_s5 }
 0x1f2   : > { %p1142_p6 = pnand %p1141_p5, %p1279_p4 }
 0x1f3   : > { %p1147_p11 = por %p1146_p10, %p1145_p9 }
 0x1f4   : > { %p1143_p7 = pneg %p1142_p6 }
 0x1f6   : > { %p1148_p12 = pnand %p1147_p11, %p1143_p7 }
 0x1f8   : > { %1151 = shalt.err (!%p1148_p12)
}
 0x1f9   : > { %1034 = dma.vmem_to_hbm [thread:$0]  (%p1279_p4), %s750_s13, 128, %s1406_s22, %s735_s24  }
 0x1fa PF: > { %p1046_p13 = scmp.ge.s32.totalorder %s1206_s20, 2  ;;  %s761_s11 = sand.u32 1, %s1186_s15  }
 0x1fb   : > { %s762_s12 = scalar_lea.sflag [#allocation4], %s761_s11 }
 0x1fc   : > { %p1041_p0 = pnand %p1046_p13, %p1286_p8 }
 0x1fe   : > { %p1042_p1 = pneg %p1041_p0 }
 0x200   : > { %1181 = dma.done.wait (%p1042_p1), %s762_s12, 128  }
 0x201   : > { %1183 = vsyncadd (%p1042_p1), %s762_s12, 4294967168  ;;  %s18_s20 = sadd.s32 1, %s1206_s20   ;;  %s1455_s15 = smov %s1190_s16 }
 0x202   : > { %p15_p2 = scmp.ge.s32.totalorder %s18_s20, 4   ;;  %s1456_s16 = smov %s1194_s17 }
 0x203   : > { %s1457_s17 = smov %s1292_s28  ;;  %s1458_s18 = smov %s1202_s19 }
 0x204   : > { %s1459_s19 = smov %s1461_s23  ;;  %17 = sbr.rel (!%p15_p2) target bundleno = 5 (0x5), region = 80 }
 0x209   :  { %767 = vsyncpa [#allocation3], 1 }
 0x20a   :  { %769 = vsyncpa [#allocation3 + $0x1], 1 }
 0x20b   :  { %770 = vsyncpa [#allocation4], 1 }
 0x20c   :  { %772 = vsyncpa [#allocation4 + $0x1], 1 }

</bundles_post_ra>
